<compile_context>
chip_gen: v5e
topology: v5e:2x2
jax: 0.10.0
libtpu: 0.0.40
codegen_flags: <defaults>
</compile_context>

<pallas_src>
import jax
import jax.numpy as jnp
from jax.experimental import pallas as pl
from jax.experimental.pallas import tpu as pltpu

EMBED_DIM = 768
NUM_CLASSES = 2
TIC_FEATS = 25      # TICA output channels ([25]*4 TCN -> last level has 25 ch)
CP_FEATS = 4        # cp width implied by Linear(embed_dim + 25 + 4, embed_dim)
PAD = 128           # pad the merged (25+4)-wide segment to one full lane tile
MAX_TM = 256        # batch tile size cap


def tic_luv_fused_head_kernel(xvd_ref, xtc_ref, wvd_ref, wtc_ref, b_ref, out_ref):
    """out = [x_vd | x_ticcp] @ W_fused + b_fused  (first_head∘head folded)."""
    acc = jnp.dot(xvd_ref[...], wvd_ref[...], preferred_element_type=jnp.float32)
    acc = acc + jnp.dot(xtc_ref[...], wtc_ref[...],
                        preferred_element_type=jnp.float32)
    out_ref[...] = (acc + b_ref[...]).astype(out_ref.dtype)


def prepare_head_params(params):
    """One-time (offline) prep: fold first_head into head and pre-pad weights.

    params holds nn.Linear weights stored transposed as (in, out):
      first_head_w (797, 768), first_head_b (768,), head_w (768, 2), head_b (2,)
    """
    hp = jax.lax.Precision.HIGHEST
    w1, b1 = params["first_head_w"], params["first_head_b"]
    w2, b2 = params["head_w"], params["head_b"]

    w_fused = jnp.dot(w1, w2, precision=hp)            # (797, 2)
    b_fused = jnp.dot(b1, w2, precision=hp) + b2       # (2,)

    w_vd = w_fused[:EMBED_DIM]                         # (768, 2)
    # merged tic+cp segment, zero-padded to a full 128-lane tile (done once).
    w_ticcp = jnp.zeros((PAD, NUM_CLASSES), w_fused.dtype)
    w_ticcp = w_ticcp.at[:TIC_FEATS + CP_FEATS].set(w_fused[EMBED_DIM:])
    return {
        "w_vd": w_vd,                                  # (768, 2)
        "w_ticcp": w_ticcp,                            # (128, 2)
        "b": b_fused.reshape(1, NUM_CLASSES),          # (1, 2)
    }


def tic_luv_head(x_vd, x_tic, cp, head_params):
    """Fused cat + first_head + head.

    x_vd : (B, 768) f32,  x_tic : (B, 25) f32,  cp : (B, 4) f32
    returns logits (B, 2) f32
    """
    B = x_vd.shape[0]

    # Tiny per-call packing: merge tic+cp into one padded 128-lane segment.
    x_ticcp = jnp.zeros((B, PAD), x_vd.dtype)
    x_ticcp = x_ticcp.at[:, :TIC_FEATS].set(x_tic)
    x_ticcp = x_ticcp.at[:, TIC_FEATS:TIC_FEATS + CP_FEATS].set(cp)

    # Batch tiling: tm is either the full batch (small B) or a multiple of 8.
    tm = B if B <= MAX_TM else MAX_TM
    grid = (pl.cdiv(B, tm),)

    out = pl.pallas_call(
        tic_luv_fused_head_kernel,
        grid=grid,
        in_specs=[
            pl.BlockSpec((tm, EMBED_DIM), lambda i: (i, 0)),        # x_vd tile
            pl.BlockSpec((tm, PAD), lambda i: (i, 0)),              # x_ticcp tile
            pl.BlockSpec((EMBED_DIM, NUM_CLASSES), lambda i: (0, 0)),  # W_vd (resident)
            pl.BlockSpec((PAD, NUM_CLASSES), lambda i: (0, 0)),        # W_ticcp (resident)
            pl.BlockSpec((1, NUM_CLASSES), lambda i: (0, 0)),          # b_fused
        ],
        out_specs=pl.BlockSpec((tm, NUM_CLASSES), lambda i: (i, 0)),
        out_shape=jax.ShapeDtypeStruct((B, NUM_CLASSES), jnp.float32),
        compiler_params=pltpu.CompilerParams(
            dimension_semantics=("parallel",)),
    )(x_vd, x_ticcp, head_params["w_vd"], head_params["w_ticcp"],
      head_params["b"])
    return out


def tic_luv_forward(x_vd, x_vd2tic, x_tic, cp, head_params):
    """Mirrors TIC_LUV.forward's return structure: (logits, x_vd2tic, x_tic)."""
    logits = tic_luv_head(x_vd, x_tic, cp, head_params)
    return logits, x_vd2tic, x_tic


def init_params(key):
    k1, k2, k3, k4 = jax.random.split(key, 4)
    in1 = EMBED_DIM + TIC_FEATS + CP_FEATS
    return {
        # stored as (in, out) == transposed nn.Linear.weight
        "first_head_w": jax.random.normal(k1, (in1, EMBED_DIM), jnp.float32) * 0.02,
        "first_head_b": jax.random.normal(k2, (EMBED_DIM,), jnp.float32) * 0.02,
        "head_w": jax.random.normal(k3, (EMBED_DIM, NUM_CLASSES), jnp.float32) * 0.02,
        "head_b": jax.random.normal(k4, (NUM_CLASSES,), jnp.float32) * 0.02,
    }


if __name__ == "__main__":
    key = jax.random.PRNGKey(0)
    kp, kv, kt, kc, kv2 = jax.random.split(key, 5)

    B = 2
    params = init_params(kp)
    head_params = prepare_head_params(params)   # one-time offline weight prep

    # Backbone outputs (DMUV / TICA are undefined in the provided source).
    x_vd = jax.random.normal(kv, (B, EMBED_DIM), jnp.float32)       # DMUV cls feature
    x_vd2tic = jax.random.normal(kv2, (B, EMBED_DIM), jnp.float32)  # passthrough output
    x_tic = jax.random.normal(kt, (B, TIC_FEATS), jnp.float32)      # TICA feature
    cp = jax.random.normal(kc, (B, CP_FEATS), jnp.float32)

    logits, out_vd2tic, out_tic = tic_luv_forward(x_vd, x_vd2tic, x_tic, cp,
                                                  head_params)
    logits = jax.block_until_ready(logits)

    # Pure-JAX reference of the unfused head path (cat -> first_head -> head).
    hp = jax.lax.Precision.HIGHEST
    feat = jnp.concatenate([x_vd, x_tic, cp], axis=1)
    h_ref = jnp.dot(feat, params["first_head_w"], precision=hp) + params["first_head_b"]
    ref = jnp.dot(h_ref, params["head_w"], precision=hp) + params["head_b"]

    assert logits.shape == (B, NUM_CLASSES)
    assert jnp.allclose(logits, ref, atol=1e-4, rtol=1e-4), "mismatch vs reference"
    assert out_vd2tic.shape == (B, EMBED_DIM) and out_tic.shape == (B, TIC_FEATS)

    print("KERNEL_OK")
</pallas_src>

<mosaic_0001>
module attributes {stable_mosaic.version = 11 : i64} {
  func.func @tic_luv_fused_head_kernel(%arg0: i32, %arg1: memref<2x768xf32, #tpu.memory_space<vmem>>, %arg2: memref<2x128xf32, #tpu.memory_space<vmem>>, %arg3: memref<768x2xf32, #tpu.memory_space<vmem>>, %arg4: memref<128x2xf32, #tpu.memory_space<vmem>>, %arg5: memref<1x2xf32, #tpu.memory_space<vmem>>, %arg6: memref<2x2xf32, #tpu.memory_space<vmem>>) attributes {dimension_semantics = [#tpu.dimension_semantics<parallel>], iteration_bounds = array<i64: 1>, scalar_prefetch = 0 : i64, scratch_operands = 0 : i64, tpu.core_type = #tpu.core_type<tc>, window_params = [{transform_indices = @transform_0, window_bounds = array<i64: 2, 768>}, {transform_indices = @transform_1, window_bounds = array<i64: 2, 128>}, {pipeline_mode = #tpu.pipeline_mode<synchronous>, transform_indices = @transform_2, window_bounds = array<i64: 768, 2>}, {pipeline_mode = #tpu.pipeline_mode<synchronous>, transform_indices = @transform_3, window_bounds = array<i64: 128, 2>}, {pipeline_mode = #tpu.pipeline_mode<synchronous>, transform_indices = @transform_4, window_bounds = array<i64: 1, 2>}, {transform_indices = @transform_5, window_bounds = array<i64: 2, 2>}]} {
    %c0 = arith.constant 0 : index
    %c0_0 = arith.constant 0 : index
    %0 = vector.load %arg1[%c0, %c0_0] : memref<2x768xf32, #tpu.memory_space<vmem>>, vector<2x768xf32>
    %c0_1 = arith.constant 0 : index
    %c0_2 = arith.constant 0 : index
    %1 = vector.load %arg3[%c0_1, %c0_2] : memref<768x2xf32, #tpu.memory_space<vmem>>, vector<768x2xf32>
    %cst = arith.constant dense<0.000000e+00> : vector<2x2xf32>
    %2 = tpu.matmul %0, %1, %cst {dimension_numbers = #tpu.dot_dimension_numbers<[1], [0], [0], [1], [0, 0, 1, 1], [], []>} : vector<2x768xf32>, vector<768x2xf32>, vector<2x2xf32> -> vector<2x2xf32>
    %c0_3 = arith.constant 0 : index
    %c0_4 = arith.constant 0 : index
    %3 = vector.load %arg2[%c0_3, %c0_4] : memref<2x128xf32, #tpu.memory_space<vmem>>, vector<2x128xf32>
    %c0_5 = arith.constant 0 : index
    %c0_6 = arith.constant 0 : index
    %4 = vector.load %arg4[%c0_5, %c0_6] : memref<128x2xf32, #tpu.memory_space<vmem>>, vector<128x2xf32>
    %cst_7 = arith.constant dense<0.000000e+00> : vector<2x2xf32>
    %5 = tpu.matmul %3, %4, %cst_7 {dimension_numbers = #tpu.dot_dimension_numbers<[1], [0], [0], [1], [0, 0, 1, 1], [], []>} : vector<2x128xf32>, vector<128x2xf32>, vector<2x2xf32> -> vector<2x2xf32>
    %6 = arith.addf %2, %5 : vector<2x2xf32>
    %c0_8 = arith.constant 0 : index
    %c0_9 = arith.constant 0 : index
    %7 = vector.load %arg5[%c0_8, %c0_9] : memref<1x2xf32, #tpu.memory_space<vmem>>, vector<1x2xf32>
    %8 = vector.broadcast %7 : vector<1x2xf32> to vector<2x2xf32>
    %9 = arith.addf %6, %8 : vector<2x2xf32>
    %c0_10 = arith.constant 0 : index
    %c0_11 = arith.constant 0 : index
    %10 = vector.load %arg6[%c0_10, %c0_11] : memref<2x2xf32, #tpu.memory_space<vmem>>, vector<2x2xf32>
    tpu.vector_store %arg6[%c0_10, %c0_11], %9 {strides = array<i32>} : memref<2x2xf32, #tpu.memory_space<vmem>>, vector<2x2xf32>,
    return
  }
  func.func @transform_0(%arg0: i32) -> (i32, i32) {
    %c0_i32 = arith.constant 0 : i32
    %c0_i32_0 = arith.constant 0 : i32
    return %arg0, %c0_i32 : i32, i32
  }
  func.func @transform_1(%arg0: i32) -> (i32, i32) {
    %c0_i32 = arith.constant 0 : i32
    %c0_i32_0 = arith.constant 0 : i32
    return %arg0, %c0_i32 : i32, i32
  }
  func.func @transform_2(%arg0: i32) -> (i32, i32) {
    %c0_i32 = arith.constant 0 : i32
    %c0_i32_0 = arith.constant 0 : i32
    %c0_i32_1 = arith.constant 0 : i32
    return %c0_i32, %c0_i32_0 : i32, i32
  }
  func.func @transform_3(%arg0: i32) -> (i32, i32) {
    %c0_i32 = arith.constant 0 : i32
    %c0_i32_0 = arith.constant 0 : i32
    %c0_i32_1 = arith.constant 0 : i32
    return %c0_i32, %c0_i32_0 : i32, i32
  }
  func.func @transform_4(%arg0: i32) -> (i32, i32) {
    %c0_i32 = arith.constant 0 : i32
    %c0_i32_0 = arith.constant 0 : i32
    %c0_i32_1 = arith.constant 0 : i32
    return %c0_i32, %c0_i32_0 : i32, i32
  }
  func.func @transform_5(%arg0: i32) -> (i32, i32) {
    %c0_i32 = arith.constant 0 : i32
    %c0_i32_0 = arith.constant 0 : i32
    return %arg0, %c0_i32 : i32, i32
  }
}

</mosaic_0001>

<bundles_post_ra>
// kernel: tpu_custom_call.1
= control target key start
LH: loop header
LB: loop body
LE: loop exit
PB: predicated region body
PF: predicated region fallthrough
CT: control target
= control target key end

     0   :  { %s726_s0 = inlined_call_operand.vmem [shape: f32[2,768], index: 0, kind: input, shape index: {}]   ;;  %s727_s1 = inlined_call_operand.vmem [shape: f32[2,128], index: 1, kind: input, shape index: {}]   ;;  %s728_s2 = inlined_call_operand.vmem [shape: f32[768,2], index: 2, kind: input, shape index: {}]   ;;  %s729_s3 = inlined_call_operand.vmem [shape: f32[128,2], index: 3, kind: input, shape index: {}]   ;;  %s730_s4 = inlined_call_operand.vmem [shape: f32[1,2], index: 4, kind: input, shape index: {}]   ;;  %s731_s5 = inlined_call_operand.hbm [shape: f32[2,2], index: 5, kind: output, shape index: {}]  }
   0x1   :  { %v135_v0 = vld [vmem:[%s729_s3 + $0x78] sm:$0xff]  ;;  %v134_v2 = vld [vmem:[%s729_s3 + $0x70] sm:$0xff]  ;;  %v133_v5 = vld [vmem:[%s729_s3 + $0x68] sm:$0xff] }
   0x2   :  { %v54_v1 = vld [vmem:[%s728_s2 + $0xf8] sm:$0xff]  ;;  %136 = vmatpush.msra.mxu0 %v135_v0  ;;  %v53_v4 = vld [vmem:[%s728_s2 + $0xf0] sm:$0xff]  ;;  %v52_v7 = vld [vmem:[%s728_s2 + $0xe8] sm:$0xff] }
   0x3   :  { %193 = vmatpush.msra.mxu2 %v54_v1  ;;  %v38_v3 = vld [vmem:[%s728_s2 + $0x78] sm:$0xff]  ;;  %v37_v6 = vld [vmem:[%s728_s2 + $0x70] sm:$0xff]  ;;  %v36_v8 = vld [vmem:[%s728_s2 + $0x68] sm:$0xff] }
   0x4   :  { %173 = vmatpush.msra.mxu1 %v38_v3  ;;  %137 = vmatpush.msra.mxu0 %v134_v2  ;;  %v132_v9 = vld [vmem:[%s729_s3 + $0x60] sm:$0xff]  ;;  %v131_v12 = vld [vmem:[%s729_s3 + $0x58] sm:$0xff]  ;;  %v130_v15 = vld [vmem:[%s729_s3 + $0x50] sm:$0xff] }
   0x5   :  { %194 = vmatpush.msra.mxu2 %v53_v4  ;;  %v51_v10 = vld [vmem:[%s728_s2 + $0xe0] sm:$0xff]  ;;  %v50_v13 = vld [vmem:[%s728_s2 + $0xd8] sm:$0xff]  ;;  %v49_v16 = vld [vmem:[%s728_s2 + $0xd0] sm:$0xff] }
   0x6   :  { %174 = vmatpush.msra.mxu1 %v37_v6  ;;  %138 = vmatpush.msra.mxu0 %v133_v5  ;;  %v35_v11 = vld [vmem:[%s728_s2 + $0x60] sm:$0xff]  ;;  %v34_v14 = vld [vmem:[%s728_s2 + $0x58] sm:$0xff]  ;;  %v33_v17 = vld [vmem:[%s728_s2 + $0x50] sm:$0xff] }
   0x7   :  { %195 = vmatpush.msra.mxu2 %v52_v7  ;;  %v129_v18 = vld [vmem:[%s729_s3 + $0x48] sm:$0xff]  ;;  %v70_v21 = vld [vmem:[%s728_s2 + $0x178] sm:$0xff]  ;;  %v128_v22 = vld [vmem:[%s729_s3 + $0x40] sm:$0xff] }
   0x8   :  { %175 = vmatpush.msra.mxu1 %v36_v8  ;;  %139 = vmatpush.msra.mxu0 %v132_v9  ;;  %v48_v19 = vld [vmem:[%s728_s2 + $0xc8] sm:$0xff]  ;;  %v47_v23 = vld [vmem:[%s728_s2 + $0xc0] sm:$0xff]  ;;  %v69_v25 = vld [vmem:[%s728_s2 + $0x170] sm:$0xff] }
   0x9   :  { %196 = vmatpush.msra.mxu2 %v51_v10  ;;  %v32_v20 = vld [vmem:[%s728_s2 + $0x48] sm:$0xff]  ;;  %213 = vmatpush.msra.mxu3 %v70_v21  ;;  %v31_v24 = vld [vmem:[%s728_s2 + $0x40] sm:$0xff]  ;;  %v127_v26 = vld [vmem:[%s729_s3 + $0x38] sm:$0xff] }
   0xa   :  { %176 = vmatpush.msra.mxu1 %v35_v11  ;;  %140 = vmatpush.msra.mxu0 %v131_v12  ;;  %v46_v27 = vld [vmem:[%s728_s2 + $0xb8] sm:$0xff]  ;;  %v68_v28 = vld [vmem:[%s728_s2 + $0x168] sm:$0xff]  ;;  %v67_v30 = vld [vmem:[%s728_s2 + $0x160] sm:$0xff] }
   0xb   :  { %197 = vmatpush.msra.mxu2 %v50_v13  ;;  %214 = vmatpush.msra.mxu3 %v69_v25  ;;  %v30_v29 = vld [vmem:[%s728_s2 + $0x38] sm:$0xff]  ;;  %v126_v31 = vld [vmem:[%s729_s3 + $0x30] sm:$0xff]  ;;  %v125_v35 = vld [vmem:[%s729_s3 + $0x28] sm:$0xff] }
   0xc   :  { %177 = vmatpush.msra.mxu1 %v34_v14  ;;  %141 = vmatpush.msra.mxu0 %v130_v15  ;;  %v45_v32 = vld [vmem:[%s728_s2 + $0xb0] sm:$0xff]  ;;  %v66_v34 = vld [vmem:[%s728_s2 + $0x158] sm:$0xff]  ;;  %v44_v36 = vld [vmem:[%s728_s2 + $0xa8] sm:$0xff] }
   0xd   :  { %198 = vmatpush.msra.mxu2 %v49_v16  ;;  %215 = vmatpush.msra.mxu3 %v68_v28  ;;  %v29_v33 = vld [vmem:[%s728_s2 + $0x30] sm:$0xff]  ;;  %v28_v37 = vld [vmem:[%s728_s2 + $0x28] sm:$0xff]  ;;  %v124_v39 = vld [vmem:[%s729_s3 + $0x20] sm:$0xff] }
   0xe   :  { %178 = vmatpush.msra.mxu1 %v33_v17  ;;  %142 = vmatpush.msra.mxu0 %v129_v18  ;;  %v65_v38 = vld [vmem:[%s728_s2 + $0x150] sm:$0xff]  ;;  %v43_v40 = vld [vmem:[%s728_s2 + $0xa0] sm:$0xff]  ;;  %v64_v42 = vld [vmem:[%s728_s2 + $0x148] sm:$0xff] }
   0xf   :  { %199 = vmatpush.msra.mxu2 %v48_v19  ;;  %216 = vmatpush.msra.mxu3 %v67_v30  ;;  %v27_v41 = vld [vmem:[%s728_s2 + $0x20] sm:$0xff]  ;;  %v123_v43 = vld [vmem:[%s729_s3 + $0x18] sm:$0xff]  ;;  %v122_v47 = vld [vmem:[%s729_s3 + $0x10] sm:$0xff] }
  0x10   :  { %179 = vmatpush.msra.mxu1 %v32_v20  ;;  %143 = vmatpush.msra.mxu0 %v128_v22  ;;  %v42_v44 = vld [vmem:[%s728_s2 + $0x98] sm:$0xff]  ;;  %v63_v46 = vld [vmem:[%s728_s2 + $0x140] sm:$0xff]  ;;  %v41_v48 = vld [vmem:[%s728_s2 + $0x90] sm:$0xff] }
  0x11   :  { %200 = vmatpush.msra.mxu2 %v47_v23  ;;  %217 = vmatpush.msra.mxu3 %v66_v34  ;;  %v26_v45 = vld [vmem:[%s728_s2 + $0x18] sm:$0xff]  ;;  %v25_v49 = vld [vmem:[%s728_s2 + $0x10] sm:$0xff]  ;;  %v121_v51 = vld [vmem:[%s729_s3 + $0x8] sm:$0xff] }
  0x12   :  { %180 = vmatpush.msra.mxu1 %v31_v24  ;;  %144 = vmatpush.msra.mxu0 %v127_v26  ;;  %v62_v50 = vld [vmem:[%s728_s2 + $0x138] sm:$0xff]  ;;  %v40_v52 = vld [vmem:[%s728_s2 + $0x88] sm:$0xff]  ;;  %v61_v54 = vld [vmem:[%s728_s2 + $0x130] sm:$0xff] }
  0x13   :  { %201 = vmatpush.msra.mxu2 %v46_v27  ;;  %218 = vmatpush.msra.mxu3 %v65_v38  ;;  %v24_v53 = vld [vmem:[%s728_s2 + $0x8] sm:$0xff]  ;;  %v120_v55 = vld [vmem:[%s729_s3] sm:$0xff]  ;;  %v86_v57 = vld [vmem:[%s728_s2 + $0x1f8] sm:$0xff] }
  0x14   :  { %181 = vmatpush.msra.mxu1 %v30_v29  ;;  %145 = vmatpush.msra.mxu0 %v126_v31  ;;  %v39_v56 = vld [vmem:[%s728_s2 + $0x80] sm:$0xff]  ;;  %v118_v58 = vld [vmem:[%s728_s2 + $0x2f8] sm:$0xff]  ;;  %v60_v60 = vld [vmem:[%s728_s2 + $0x128] sm:$0xff] }
  0x15   :  { %202 = vmatpush.msra.mxu2 %v45_v32  ;;  %219 = vmatpush.msra.mxu3 %v64_v42  ;;  %v23_v59 = vld [vmem:[%s728_s2] sm:$0xff]  ;;  %v85_v61 = vld [vmem:[%s728_s2 + $0x1f0] sm:$0xff]  ;;  %v102_v62 = vld [vmem:[%s728_s2 + $0x278] sm:$0xff] }
  0x16   :  { %182 = vmatpush.msra.mxu1 %v29_v33  ;;  %146 = vmatpush.msra.mxu0 %v125_v35  ;;  %v21_v63 = vld [vmem:[%s726_s0] sm:$0xff]  ;;  %v117_v0 = vld [vmem:[%s728_s2 + $0x2f0] sm:$0xff]  ;;  %v84_v2 = vld [vmem:[%s728_s2 + $0x1e8] sm:$0xff] }
  0x17   :  { %203 = vmatpush.msra.mxu2 %v44_v36  ;;  %220 = vmatpush.msra.mxu3 %v63_v46  ;;  %v59_v1 = vld [vmem:[%s728_s2 + $0x120] sm:$0xff]  ;;  %158 = vst [vmem:[#allocation1] ss:$4 sm:$0xff] %v21_v63  ;;  %v101_v3 = vld [vmem:[%s728_s2 + $0x270] sm:$0xff]  ;;  %v116_v4 = vld [vmem:[%s728_s2 + $0x2e8] sm:$0xff] }
  0x18   :  { %183 = vmatpush.msra.mxu1 %v28_v37  ;;  %147 = vmatpush.msra.mxu0 %v124_v39  ;;  %v58_v5 = vld [vmem:[%s728_s2 + $0x118] sm:$0xff]  ;;  %v83_v6 = vld [vmem:[%s728_s2 + $0x1e0] sm:$0xff]  ;;  %v100_v7 = vld [vmem:[%s728_s2 + $0x268] sm:$0xff] }
  0x19   :  { %204 = vmatpush.msra.mxu2 %v43_v40  ;;  %221 = vmatpush.msra.mxu3 %v62_v50  ;;  %v115_v8 = vld [vmem:[%s728_s2 + $0x2e0] sm:$0xff]  ;;  %v57_v9 = vld [vmem:[%s728_s2 + $0x110] sm:$0xff]  ;;  %v82_v10 = vld [vmem:[%s728_s2 + $0x1d8] sm:$0xff] }
  0x1a   :  { %184 = vmatpush.msra.mxu1 %v27_v41  ;;  %148 = vmatpush.msra.mxu0 %v123_v43  ;;  %v99_v11 = vld [vmem:[%s728_s2 + $0x260] sm:$0xff]  ;;  %v22_v12 = vld [vmem:[%s726_s0 + $0x8] sm:$0xf]  ;;  %v114_v13 = vld [vmem:[%s728_s2 + $0x2d8] sm:$0xff] }
  0x1b   :  { %205 = vmatpush.msra.mxu2 %v42_v44  ;;  %222 = vmatpush.msra.mxu3 %v61_v54  ;;  %v56_v14 = vld [vmem:[%s728_s2 + $0x108] sm:$0xff]  ;;  %160 = vst [vmem:[#allocation1 + $0x20] ss:$4 sm:$0xff] %v22_v12  ;;  %v81_v15 = vld [vmem:[%s728_s2 + $0x1d0] sm:$0xff]  ;;  %v98_v16 = vld [vmem:[%s728_s2 + $0x258] sm:$0xff] }
  0x1c   :  { %185 = vmatpush.msra.mxu1 %v26_v45  ;;  %149 = vmatpush.msra.mxu0 %v122_v47  ;;  %v113_v17 = vld [vmem:[%s728_s2 + $0x2d0] sm:$0xff]  ;;  %v55_v18 = vld [vmem:[%s728_s2 + $0x100] sm:$0xff]  ;;  %v80_v19 = vld [vmem:[%s728_s2 + $0x1c8] sm:$0xff] }
  0x1d   :  { %206 = vmatpush.msra.mxu2 %v41_v48  ;;  %223 = vmatpush.msra.mxu3 %v60_v60  ;;  %v97_v20 = vld [vmem:[%s728_s2 + $0x250] sm:$0xff] }
  0x1e   :  { %186 = vmatpush.msra.mxu1 %v25_v49  ;;  %150 = vmatpush.msra.mxu0 %v121_v51 }
  0x1f   :  { %207 = vmatpush.msra.mxu2 %v40_v52  ;;  %224 = vmatpush.msra.mxu3 %v59_v1 }
  0x20   :  { %187 = vmatpush.msra.mxu1 %v24_v53  ;;  %151 = vmatpush.msra.mxu0 %v120_v55 }
  0x21   :  { %208 = vmatpush.msra.mxu2 %v39_v56  ;;  %225 = vmatpush.msra.mxu3 %v58_v5 }
  0x22   :  { %233 = vmatpush.msrb.mxu0 %v86_v57  ;;  %188 = vmatpush.msra.mxu1 %v23_v59 }
  0x23   :  { %273 = vmatpush.msrb.mxu2 %v118_v58  ;;  %226 = vmatpush.msra.mxu3 %v57_v9 }
  0x24   :  { %234 = vmatpush.msrb.mxu0 %v85_v61  ;;  %253 = vmatpush.msrb.mxu1 %v102_v62 }
  0x25   :  { %274 = vmatpush.msrb.mxu2 %v117_v0  ;;  %227 = vmatpush.msra.mxu3 %v56_v14 }
  0x26   :  { %235 = vmatpush.msrb.mxu0 %v84_v2  ;;  %254 = vmatpush.msrb.mxu1 %v101_v3 }
  0x27   :  { %275 = vmatpush.msrb.mxu2 %v116_v4 }
  0x28   :  { %236 = vmatpush.msrb.mxu0 %v83_v6  ;;  %255 = vmatpush.msrb.mxu1 %v100_v7 }
  0x29   :  { %276 = vmatpush.msrb.mxu2 %v115_v8 }
  0x2a   :  { %237 = vmatpush.msrb.mxu0 %v82_v10  ;;  %256 = vmatpush.msrb.mxu1 %v99_v11 }
  0x2b   :  { %277 = vmatpush.msrb.mxu2 %v114_v13 }
  0x2c   :  { %10 = vsyncpa [#allocation3], 0  ;;  %238 = vmatpush.msrb.mxu0 %v81_v15  ;;  %257 = vmatpush.msrb.mxu1 %v98_v16  ;;  %v112_v21 = vld [vmem:[%s728_s2 + $0x2c8] sm:$0xff]  ;;  %v119_v22 = vld [vmem:[%s727_s1] sm:$0x3]  ;;  %s344_s14 = smov [#allocation2]  }
  0x2d   :  { %278 = vmatpush.msrb.mxu2 %v113_v17  ;;  %v79_v23 = vld [vmem:[%s728_s2 + $0x1c0] sm:$0xff]  ;;  %v96_v24 = vld [vmem:[%s728_s2 + $0x248] sm:$0xff]  ;;  %228 = vmatpush.msra.mxu3 %v55_v18  ;;  %v163_v26 = vld.sshfl [vmem:[#allocation1 + $0x10] sm:$0xff pattern:$0x73625140]  ;;  %s305_s15 = sshll.u32 %s344_s14, 4  ;;  %s306_s15 = int_to_ptr.vmem [resolvable:$true] %s305_s15 }
  0x2e   :  { %239 = vmatpush.msrb.mxu0 %v80_v19  ;;  %258 = vmatpush.msrb.mxu1 %v97_v20  ;;  %v111_v25 = vld [vmem:[%s728_s2 + $0x2c0] sm:$0xff]  ;;  %v78_v27 = vld [vmem:[%s728_s2 + $0x1b8] sm:$0xff]  ;;  %v77_v31 = vld [vmem:[%s728_s2 + $0x1b0] sm:$0xff]  ;;  %s307_s18 = sshll.u32 %s731_s5, 4  ;;  %vm298_vm0 = vcmask 9216   ;;  %s308_s18 = int_to_ptr.hbm [resolvable:$true] %s307_s18 }
  0x2f   :  { %279 = vmatpush.msrb.mxu2 %v112_v21  ;;  %v95_v28 = vld [vmem:[%s728_s2 + $0x240] sm:$0xff]  ;;  %152 = vmatmul.f32.vlgmr.msra.gmra.mxu0 %v119_v22  ;;  %v110_v29 = vld [vmem:[%s728_s2 + $0x2b8] sm:$0xff]  ;;  %v109_v33 = vld [vmem:[%s728_s2 + $0x2b0] sm:$0xff] }
  0x30   :  { %240 = vmatpush.msrb.mxu0 %v79_v23  ;;  %259 = vmatpush.msrb.mxu1 %v96_v24  ;;  %v161_v30 = vld.sshfl [vmem:[#allocation1] sm:$0xff pattern:$0x73625140]  ;;  %v94_v32 = vld [vmem:[%s728_s2 + $0x238] sm:$0xff]  ;;  %v76_v34 = vld [vmem:[%s728_s2 + $0x1a8] sm:$0xff] }
  0x31   :  { %280 = vmatpush.msrb.mxu2 %v111_v25  ;;  %229 = vmatmul.f32.vlgmr.msra.gmra.mxu3 %v163_v26  ;;  %v93_v35 = vld [vmem:[%s728_s2 + $0x230] sm:$0xff]  ;;  %v108_v36 = vld [vmem:[%s728_s2 + $0x2a8] sm:$0xff]  ;;  %v75_v38 = vld [vmem:[%s728_s2 + $0x1a0] sm:$0xff] }
  0x32   :  { %241 = vmatpush.msrb.mxu0 %v78_v27  ;;  %260 = vmatpush.msrb.mxu1 %v95_v28  ;;  %v162_v37 = vld.sshfl [vmem:[#allocation1 + $0x8] sm:$0xff pattern:$0x73625140]  ;;  %v107_v40 = vld [vmem:[%s728_s2 + $0x2a0] sm:$0xff]  ;;  %v74_v41 = vld [vmem:[%s728_s2 + $0x198] sm:$0xff] }
  0x33   :  { %281 = vmatpush.msrb.mxu2 %v110_v29  ;;  %189 = vmatmul.f32.vlgmr.msra.gmra.mxu1 %v161_v30  ;;  %v92_v39 = vld [vmem:[%s728_s2 + $0x228] sm:$0xff]  ;;  %v91_v42 = vld [vmem:[%s728_s2 + $0x220] sm:$0xff]  ;;  %v106_v43 = vld [vmem:[%s728_s2 + $0x298] sm:$0xff] }
  0x34   :  { %242 = vmatpush.msrb.mxu0 %v77_v31  ;;  %261 = vmatpush.msrb.mxu1 %v94_v32  ;;  %v73_v44 = vld [vmem:[%s728_s2 + $0x190] sm:$0xff]  ;;  %v90_v45 = vld [vmem:[%s728_s2 + $0x218] sm:$0xff]  ;;  %v72_v47 = vld [vmem:[%s728_s2 + $0x188] sm:$0xff] }
  0x35   :  { %282 = vmatpush.msrb.mxu2 %v109_v33  ;;  %v105_v46 = vld [vmem:[%s728_s2 + $0x290] sm:$0xff]  ;;  %v104_v49 = vld [vmem:[%s728_s2 + $0x288] sm:$0xff]  ;;  %v71_v50 = vld [vmem:[%s728_s2 + $0x180] sm:$0xff] }
  0x36   :  { %243 = vmatpush.msrb.mxu0 %v76_v34  ;;  %262 = vmatpush.msrb.mxu1 %v93_v35  ;;  %v89_v48 = vld [vmem:[%s728_s2 + $0x210] sm:$0xff]  ;;  %v88_v51 = vld [vmem:[%s728_s2 + $0x208] sm:$0xff]  ;;  %v103_v52 = vld [vmem:[%s728_s2 + $0x280] sm:$0xff] }
  0x37   :  { %283 = vmatpush.msrb.mxu2 %v108_v36  ;;  %v164_v53 = vld.sshfl [vmem:[#allocation1 + $0x18] sm:$0xff pattern:$0x73625140]  ;;  %v166_v54 = vld.sshfl [vmem:[#allocation1 + $0x28] sm:$0xff pattern:$0x73625140] }
  0x38   :  { %209 = vmatmul.f32.vlgmr.msra.gmra.mxu2 %v162_v37  ;;  %244 = vmatpush.msrb.mxu0 %v75_v38  ;;  %v87_v55 = vld [vmem:[%s728_s2 + $0x200] sm:$0xff] }
  0x39   :  { %263 = vmatpush.msrb.mxu1 %v92_v39  ;;  %284 = vmatpush.msrb.mxu2 %v107_v40  ;;  %v165_v56 = vld.sshfl [vmem:[#allocation1 + $0x20] sm:$0xff pattern:$0x73625140] }
  0x3a   :  { %245 = vmatpush.msrb.mxu0 %v74_v41  ;;  %v317_v4 = vld [vmem:[%s730_s4] ss:$0 sm:$0xff] }
  0x3b   :  { %264 = vmatpush.msrb.mxu1 %v91_v42  ;;  %285 = vmatpush.msrb.mxu2 %v106_v43 }
  0x3c   :  { %246 = vmatpush.msrb.mxu0 %v73_v44 }
  0x3d   :  { %265 = vmatpush.msrb.mxu1 %v90_v45  ;;  %286 = vmatpush.msrb.mxu2 %v105_v46 }
  0x3e   :  { %247 = vmatpush.msrb.mxu0 %v72_v47 }
  0x3f   :  { %266 = vmatpush.msrb.mxu1 %v89_v48  ;;  %287 = vmatpush.msrb.mxu2 %v104_v49 }
  0x40   :  { %248 = vmatpush.msrb.mxu0 %v71_v50 }
  0x41   :  { %267 = vmatpush.msrb.mxu1 %v88_v51  ;;  %288 = vmatpush.msrb.mxu2 %v103_v52 }
  0x42   :  { %249 = vmatmul.f32.vlgmr.msrb.gmra.mxu0 %v164_v53  ;;  %289 = vmatmul.f32.vlgmr.msrb.gmra.mxu2 %v166_v54 }
  0x43   :  { %268 = vmatpush.msrb.mxu1 %v87_v55 }
  0x44   :  { %269 = vmatmul.f32.vlgmr.msrb.gmra.mxu1 %v165_v56 }
  0xac   :  { %v153_v57 = vpop.f32.mrf.mxu0 }
  0xb0   :  { %v190_v58 = vpop.f32.mrf.mxu1 }
  0xb1   :  { %v191_v59 = vadd.f32 %v190_v58, %v153_v57 }
  0xb4   :  { %v230_v61 = vpop.f32.mrf.mxu3 }
  0xbb   :  { %v210_v60 = vpop.f32.mrf.mxu2 }
  0xbc   :  { %v211_v62 = vadd.f32 %v210_v60, %v191_v59 }
  0xbe   :  { %v231_v63 = vadd.f32 %v230_v61, %v211_v62 }
  0xbf   :  { %v250_v0 = vpop.f32.mrf.mxu0 }
  0xc0   :  { %v251_v1 = vadd.f32 %v250_v0, %v231_v63 }
  0xc1   :  { %v270_v2 = vpop.f32.mrf.mxu1 }
  0xc2   :  { %v271_v3 = vadd.f32 %v270_v2, %v251_v1 }
  0xc5   :  { %v290_v5 = vpop.f32.mrf.mxu2 }
  0xc6   :  { %v291_v6 = vadd.f32 %v290_v5, %v271_v3 }
  0xc8   :  { %v297_v7 = vadd.f32 %v317_v4, %v291_v6 }
  0xca   :  { %299 = vst.msk [vmem:[#allocation2] sm:$0x3] %vm298_vm0, %v297_v7 }
  0xcb   :  { %310 = dma.vmem_to_hbm [thread:$0]  %s306_s15, 32, %s308_s18, [#allocation3]  }
  0xcc   :  { %342 = dma.done.wait [#allocation3], 32  }
  0xcd   :  { %343 = vsyncadd [#allocation3], 4294967264 }
  0xce   :  { %315 = vsyncpa [#allocation3], 1 }

</bundles_post_ra>
